<compile_context>
chip_gen: v7x
topology: tpu7x:2x2x1
jax: 0.10.0
libtpu: 0.0.40
codegen_flags: <defaults>
</compile_context>

<pallas_src>
import jax
import jax.numpy as jnp
from jax.experimental import pallas as pl
from jax.experimental.pallas import tpu as pltpu


def _round_up(x, m):
    return (x + m - 1) // m * m


def mlp_kernel(x_ref, w1_ref, b1_ref, w2_ref, b2_ref, w3_ref, b3_ref, o_ref):
    # Fused 3-layer MLP on one batch tile. All matmuls run on the MXU with f32
    # accumulation; activations are re-cast to the (bf16) compute dtype between
    # layers so every matmul stays on the fast MXU path. ReLU / bias adds stay
    # in f32 (v5e has no bf16 VALU path; f32 elementwise is the right choice).
    compute_dtype = w1_ref.dtype

    # In-kernel f32 -> bf16 cast of the input tile (saves a wrapper-side XLA
    # cast kernel and halves the x HBM traffic vs. casting outside).
    x = x_ref[...].astype(compute_dtype)

    h1 = jnp.dot(x, w1_ref[...], preferred_element_type=jnp.float32) + b1_ref[...]
    h1 = jnp.maximum(h1, 0.0).astype(compute_dtype)

    h2 = jnp.dot(h1, w2_ref[...], preferred_element_type=jnp.float32) + b2_ref[...]
    h2 = jnp.maximum(h2, 0.0).astype(compute_dtype)

    out = jnp.dot(h2, w3_ref[...], preferred_element_type=jnp.float32) + b3_ref[...]
    o_ref[...] = out.astype(o_ref.dtype)


def mlp_forward(x, params, *, tm=512, compute_dtype=jnp.bfloat16, out_dtype=None):
    """x: (B, input_dim) float32.  params: dict of transposed weights / 2-D biases.

    Returns (B, output_dim) in `out_dtype` (default: compute_dtype, i.e. bf16).
    Matmuls run in `compute_dtype` on the MXU with f32 accumulation.
    """
    B, input_dim = x.shape
    hidden_dim = params["w1"].shape[1]
    output_dim = params["w3"].shape[1]
    if out_dtype is None:
        out_dtype = compute_dtype

    LANE = 128
    SUBLANE = 16  # bf16 sublane packing; also a multiple of the f32 sublane (8)

    # --- wrapper-side layout plumbing ----------------------------------------
    # Lane-dense output store: pad only the *output* columns to a multiple of
    # 128 so stores are full-lane vst. Do NOT pad the x contraction dim (the
    # block equals the full array dim, which is legal and keeps x traffic low).
    out_p = _round_up(output_dim, LANE)

    # Batch: pad only to the sublane multiple; partial last grid block (if any)
    # is masked by Pallas.
    b_aligned = _round_up(B, SUBLANE)

    # Effective batch tile: as large as requested, but (a) no larger than the
    # aligned batch and (b) small enough that there are >= 2 grid steps when
    # the batch allows, so the "parallel" axis can shard across v7x's 2 TCs.
    tm_eff = min(tm, b_aligned)
    if B >= 2 * SUBLANE:
        tm_eff = min(tm_eff, _round_up(pl.cdiv(B, 2), SUBLANE))
    tm_eff = max(tm_eff, SUBLANE)
    grid = (pl.cdiv(b_aligned, tm_eff),)

    # x stays f32 (cast happens inside the kernel); only pad the batch tail.
    xd = x if b_aligned == B else jnp.pad(x, ((0, b_aligned - B), (0, 0)))

    # Weights are tiny and resident -> cheap to cast/pad wrapper-side.
    w1 = params["w1"].astype(compute_dtype)
    w2 = params["w2"].astype(compute_dtype)
    w3 = params["w3"].astype(compute_dtype)
    b1 = params["b1"].astype(jnp.float32)
    b2 = params["b2"].astype(jnp.float32)
    b3 = params["b3"].astype(jnp.float32)
    if out_p != output_dim:
        w3 = jnp.pad(w3, ((0, 0), (0, out_p - output_dim)))
        b3 = jnp.pad(b3, ((0, 0), (0, out_p - output_dim)))

    # Weights / biases use a constant index_map (resident across grid steps);
    # only the batch dimension of x / out is tiled.
    full = lambda i: (0, 0)
    row = lambda i: (i, 0)

    # Advisory cost estimate so XLA schedules surrounding ops sensibly.
    out_itemsize = jnp.finfo(out_dtype).bits // 8
    flops = 2 * b_aligned * (
        input_dim * hidden_dim + hidden_dim * hidden_dim + hidden_dim * out_p
    )
    bytes_accessed = (
        xd.size * xd.dtype.itemsize
        + b_aligned * out_p * out_itemsize
        + sum(a.size * a.dtype.itemsize for a in (w1, b1, w2, b2, w3, b3))
    )
    cost = pl.CostEstimate(flops=flops, transcendentals=0, bytes_accessed=bytes_accessed)

    out_padded = pl.pallas_call(
        mlp_kernel,
        out_shape=jax.ShapeDtypeStruct((b_aligned, out_p), out_dtype),
        grid_spec=pltpu.PrefetchScalarGridSpec(
            num_scalar_prefetch=0,
            grid=grid,
            in_specs=[
                pl.BlockSpec((tm_eff, input_dim), row),        # x tile (f32, full K)
                pl.BlockSpec((input_dim, hidden_dim), full),   # w1
                pl.BlockSpec((1, hidden_dim), full),           # b1
                pl.BlockSpec((hidden_dim, hidden_dim), full),  # w2
                pl.BlockSpec((1, hidden_dim), full),           # b2
                pl.BlockSpec((hidden_dim, out_p), full),       # w3
                pl.BlockSpec((1, out_p), full),                # b3
            ],
            out_specs=pl.BlockSpec((tm_eff, out_p), row),
        ),
        compiler_params=pltpu.CompilerParams(
            dimension_semantics=("parallel",)
        ),
        cost_estimate=cost,
    )(xd, w1, b1, w2, b2, w3, b3)

    # Strip batch / lane padding.
    return out_padded[:B, :output_dim]


def init_params(key, input_dim, output_dim, hidden_dim=128, dtype=jnp.float32):
    """Deterministic init mimicking torch.nn.Linear's U(-1/sqrt(fan_in), 1/sqrt(fan_in)).
    Weights are stored transposed: (in_features, out_features)."""
    keys = jax.random.split(key, 6)

    def linear(kw, kb, fan_in, fan_out):
        bound = 1.0 / jnp.sqrt(jnp.float32(fan_in))
        w = jax.random.uniform(kw, (fan_in, fan_out), dtype, -bound, bound)
        b = jax.random.uniform(kb, (1, fan_out), dtype, -bound, bound)
        return w, b

    w1, b1 = linear(keys[0], keys[1], input_dim, hidden_dim)
    w2, b2 = linear(keys[2], keys[3], hidden_dim, hidden_dim)
    w3, b3 = linear(keys[4], keys[5], hidden_dim, output_dim)
    return {"w1": w1, "b1": b1, "w2": w2, "b2": b2, "w3": w3, "b3": b3}


def mlp_reference(x, p):
    h1 = jnp.maximum(x @ p["w1"] + p["b1"], 0.0)
    h2 = jnp.maximum(h1 @ p["w2"] + p["b2"], 0.0)
    return h2 @ p["w3"] + p["b3"]


if __name__ == "__main__":
    key = jax.random.PRNGKey(0)
    k_x, k_p = jax.random.split(key)

    batch = 64
    input_dim = 32
    hidden_dim = 128
    output_dim = 16

    x = jax.random.normal(k_x, (batch, input_dim), jnp.float32)
    params = init_params(k_p, input_dim, output_dim, hidden_dim)

    out = mlp_forward(x, params)  # bf16 compute/output, f32 accumulate
    out = jax.block_until_ready(out)

    ref = mlp_reference(x, params)  # f32 reference
    assert out.shape == (batch, output_dim)
    # bf16 matmuls + bf16 output vs f32 reference: loosened tolerance.
    assert jnp.allclose(out.astype(jnp.float32), ref, atol=2e-2, rtol=2e-2), \
        "mismatch vs JAX reference"

    print("KERNEL_OK")
</pallas_src>

<mosaic_0001>
module attributes {stable_mosaic.version = 11 : i64} {
  func.func @mlp_kernel(%arg0: i32, %arg1: memref<32x32xf32, #tpu.memory_space<vmem>>, %arg2: memref<32x128xbf16, #tpu.memory_space<vmem>>, %arg3: memref<1x128xf32, #tpu.memory_space<vmem>>, %arg4: memref<128x128xbf16, #tpu.memory_space<vmem>>, %arg5: memref<1x128xf32, #tpu.memory_space<vmem>>, %arg6: memref<128x128xbf16, #tpu.memory_space<vmem>>, %arg7: memref<1x128xf32, #tpu.memory_space<vmem>>, %arg8: memref<32x128xbf16, #tpu.memory_space<vmem>>) attributes {dimension_semantics = [#tpu.dimension_semantics<parallel>], iteration_bounds = array<i64: 2>, scalar_prefetch = 0 : i64, scratch_operands = 0 : i64, tpu.core_type = #tpu.core_type<tc>, window_params = [{transform_indices = @transform_0, window_bounds = array<i64: 32, 32>}, {pipeline_mode = #tpu.pipeline_mode<synchronous>, transform_indices = @transform_1, window_bounds = array<i64: 32, 128>}, {pipeline_mode = #tpu.pipeline_mode<synchronous>, transform_indices = @transform_2, window_bounds = array<i64: 1, 128>}, {pipeline_mode = #tpu.pipeline_mode<synchronous>, transform_indices = @transform_3, window_bounds = array<i64: 128, 128>}, {pipeline_mode = #tpu.pipeline_mode<synchronous>, transform_indices = @transform_4, window_bounds = array<i64: 1, 128>}, {pipeline_mode = #tpu.pipeline_mode<synchronous>, transform_indices = @transform_5, window_bounds = array<i64: 128, 128>}, {pipeline_mode = #tpu.pipeline_mode<synchronous>, transform_indices = @transform_6, window_bounds = array<i64: 1, 128>}, {transform_indices = @transform_7, window_bounds = array<i64: 32, 128>}]} {
    %c0 = arith.constant 0 : index
    %c0_0 = arith.constant 0 : index
    %0 = vector.load %arg1[%c0, %c0_0] : memref<32x32xf32, #tpu.memory_space<vmem>>, vector<32x32xf32>
    %1 = arith.truncf %0 : vector<32x32xf32> to vector<32x32xbf16>
    %c0_1 = arith.constant 0 : index
    %c0_2 = arith.constant 0 : index
    %2 = vector.load %arg2[%c0_1, %c0_2] : memref<32x128xbf16, #tpu.memory_space<vmem>>, vector<32x128xbf16>
    %cst = arith.constant dense<0.000000e+00> : vector<32x128xf32>
    %3 = tpu.matmul %1, %2, %cst {dimension_numbers = #tpu.dot_dimension_numbers<[1], [0], [0], [1], [0, 0, 1, 1], [], []>} : vector<32x32xbf16>, vector<32x128xbf16>, vector<32x128xf32> -> vector<32x128xf32>
    %c0_3 = arith.constant 0 : index
    %c0_4 = arith.constant 0 : index
    %4 = vector.load %arg3[%c0_3, %c0_4] : memref<1x128xf32, #tpu.memory_space<vmem>>, vector<1x128xf32>
    %5 = vector.broadcast %4 : vector<1x128xf32> to vector<32x128xf32>
    %6 = arith.addf %3, %5 : vector<32x128xf32>
    %cst_5 = arith.constant 0.000000e+00 : f32
    %7 = vector.broadcast %cst_5 : f32 to vector<32x128xf32>
    %8 = arith.maximumf %6, %7 : vector<32x128xf32>
    %9 = arith.truncf %8 : vector<32x128xf32> to vector<32x128xbf16>
    %c0_6 = arith.constant 0 : index
    %c0_7 = arith.constant 0 : index
    %10 = vector.load %arg4[%c0_6, %c0_7] : memref<128x128xbf16, #tpu.memory_space<vmem>>, vector<128x128xbf16>
    %cst_8 = arith.constant dense<0.000000e+00> : vector<32x128xf32>
    %11 = tpu.matmul %9, %10, %cst_8 {dimension_numbers = #tpu.dot_dimension_numbers<[1], [0], [0], [1], [0, 0, 1, 1], [], []>} : vector<32x128xbf16>, vector<128x128xbf16>, vector<32x128xf32> -> vector<32x128xf32>
    %c0_9 = arith.constant 0 : index
    %c0_10 = arith.constant 0 : index
    %12 = vector.load %arg5[%c0_9, %c0_10] : memref<1x128xf32, #tpu.memory_space<vmem>>, vector<1x128xf32>
    %13 = vector.broadcast %12 : vector<1x128xf32> to vector<32x128xf32>
    %14 = arith.addf %11, %13 : vector<32x128xf32>
    %cst_11 = arith.constant 0.000000e+00 : f32
    %15 = vector.broadcast %cst_11 : f32 to vector<32x128xf32>
    %16 = arith.maximumf %14, %15 : vector<32x128xf32>
    %17 = arith.truncf %16 : vector<32x128xf32> to vector<32x128xbf16>
    %c0_12 = arith.constant 0 : index
    %c0_13 = arith.constant 0 : index
    %18 = vector.load %arg6[%c0_12, %c0_13] : memref<128x128xbf16, #tpu.memory_space<vmem>>, vector<128x128xbf16>
    %cst_14 = arith.constant dense<0.000000e+00> : vector<32x128xf32>
    %19 = tpu.matmul %17, %18, %cst_14 {dimension_numbers = #tpu.dot_dimension_numbers<[1], [0], [0], [1], [0, 0, 1, 1], [], []>} : vector<32x128xbf16>, vector<128x128xbf16>, vector<32x128xf32> -> vector<32x128xf32>
    %c0_15 = arith.constant 0 : index
    %c0_16 = arith.constant 0 : index
    %20 = vector.load %arg7[%c0_15, %c0_16] : memref<1x128xf32, #tpu.memory_space<vmem>>, vector<1x128xf32>
    %21 = vector.broadcast %20 : vector<1x128xf32> to vector<32x128xf32>
    %22 = arith.addf %19, %21 : vector<32x128xf32>
    %23 = arith.truncf %22 : vector<32x128xf32> to vector<32x128xbf16>
    %c0_17 = arith.constant 0 : index
    %c0_18 = arith.constant 0 : index
    %24 = vector.load %arg8[%c0_17, %c0_18] : memref<32x128xbf16, #tpu.memory_space<vmem>>, vector<32x128xbf16>
    tpu.vector_store %arg8[%c0_17, %c0_18], %23 {strides = array<i32>} : memref<32x128xbf16, #tpu.memory_space<vmem>>, vector<32x128xbf16>,
    return
  }
  func.func @transform_0(%arg0: i32) -> (i32, i32) {
    %c0_i32 = arith.constant 0 : i32
    %c0_i32_0 = arith.constant 0 : i32
    return %arg0, %c0_i32 : i32, i32
  }
  func.func @transform_1(%arg0: i32) -> (i32, i32) {
    %c0_i32 = arith.constant 0 : i32
    %c0_i32_0 = arith.constant 0 : i32
    %c0_i32_1 = arith.constant 0 : i32
    return %c0_i32, %c0_i32_0 : i32, i32
  }
  func.func @transform_2(%arg0: i32) -> (i32, i32) {
    %c0_i32 = arith.constant 0 : i32
    %c0_i32_0 = arith.constant 0 : i32
    %c0_i32_1 = arith.constant 0 : i32
    return %c0_i32, %c0_i32_0 : i32, i32
  }
  func.func @transform_3(%arg0: i32) -> (i32, i32) {
    %c0_i32 = arith.constant 0 : i32
    %c0_i32_0 = arith.constant 0 : i32
    %c0_i32_1 = arith.constant 0 : i32
    return %c0_i32, %c0_i32_0 : i32, i32
  }
  func.func @transform_4(%arg0: i32) -> (i32, i32) {
    %c0_i32 = arith.constant 0 : i32
    %c0_i32_0 = arith.constant 0 : i32
    %c0_i32_1 = arith.constant 0 : i32
    return %c0_i32, %c0_i32_0 : i32, i32
  }
  func.func @transform_5(%arg0: i32) -> (i32, i32) {
    %c0_i32 = arith.constant 0 : i32
    %c0_i32_0 = arith.constant 0 : i32
    %c0_i32_1 = arith.constant 0 : i32
    return %c0_i32, %c0_i32_0 : i32, i32
  }
  func.func @transform_6(%arg0: i32) -> (i32, i32) {
    %c0_i32 = arith.constant 0 : i32
    %c0_i32_0 = arith.constant 0 : i32
    %c0_i32_1 = arith.constant 0 : i32
    return %c0_i32, %c0_i32_0 : i32, i32
  }
  func.func @transform_7(%arg0: i32) -> (i32, i32) {
    %c0_i32 = arith.constant 0 : i32
    %c0_i32_0 = arith.constant 0 : i32
    return %arg0, %c0_i32 : i32, i32
  }
}

</mosaic_0001>

<bundles_post_ra>
// kernel: tpu_custom_call.1
= control target key start
LH: loop header
LB: loop body
LE: loop exit
PB: predicated region body
PF: predicated region fallthrough
CT: control target
= control target key end

     0   :  { %12 = vsyncpa [#allocation3], 0  ;;  %s1260_s0 = inlined_call_operand.vmem [shape: f32[64,32], index: 0, kind: input, shape index: {}]   ;;  %s1261_s1 = inlined_call_operand.vmem [shape: bf16[32,128], index: 1, kind: input, shape index: {}]   ;;  %s1262_s2 = inlined_call_operand.vmem [shape: f32[1,128], index: 2, kind: input, shape index: {}]   ;;  %s1263_s3 = inlined_call_operand.vmem [shape: bf16[128,128], index: 3, kind: input, shape index: {}]   ;;  %s1264_s4 = inlined_call_operand.vmem [shape: f32[1,128], index: 4, kind: input, shape index: {}]   ;;  %s1265_s5 = inlined_call_operand.hbm [shape: bf16[128,128], index: 5, kind: input, shape index: {}]   ;;  %s1266_s6 = inlined_call_operand.vmem [shape: f32[1,128], index: 6, kind: input, shape index: {}]   ;;  %s1267_s7 = inlined_call_operand.hbm [shape: bf16[64,128], index: 7, kind: output, shape index: {}]  }
   0x1   :  { %13 = vsyncpa [#allocation4], 0 }
   0x2   :  { %15 = vsyncpa [#allocation4 + $0x1], 0  ;;  %s1084_s24 = smov 0   ;;  %s1086_s25 = smov 0  }
   0x3   :  { %s1088_s26 = smov 0   ;;  %s1090_s27 = smov 0  }
   0x4 LB: > { %s1105_s28 = sadd.s32 4294967295, %s1036_s27   ;;  %s741_s29 = sadd.s32 4294967294, %s1036_s27   ;;  %s1036_s27 = sphi %s1090_s27, %s1283_s27   ;;  %s1032_s26 = sphi %s1088_s26, %s1282_s26   ;;  %s1028_s25 = sphi %s1086_s25, %s1281_s25   ;;  %s1024_s24 = sphi %s1084_s24, %s1280_s24  }
   0x5   : > { %s1109_s30 = sadd.s32 1, %s1036_s27   ;;  %s180_s8 = sadd.s32 1, %s1032_s26 }
   0x6   : > { %s177_s9 = ssub.s32 %s1036_s27, %s1109_s30  ;;  %p190_p0 = scmp.ne.s32.totalorder %s1032_s26, %s1028_s25 }
   0x7   : > { %p178_p1 = scmp.eq.s32.totalorder %s177_s9, 0  ;;  %p191_p2 = scmp.eq.s32.totalorder %s1105_s28, 1 }
   0x8   : > { %p196_p3 = scmp.ne.s32.totalorder %s1028_s25, %s1024_s24  ;;  %p197_p4 = scmp.eq.s32.totalorder %s741_s29, 1 }
   0x9   : > { %s1120_s10 = scalar_select %p178_p1, %s1032_s26, %s180_s8  }
   0xa   : > { %p1122_p5 = por %p191_p2, %p190_p0  ;;  %p1126_p6 = por %p197_p4, %p196_p3 }
   0xb   : > { %p742_p7 = scmp.ge.s32.totalorder %s1036_s27, 1  ;;  %p204_p8 = scmp.lt.s32.totalorder %s1036_s27, 3 }
   0xc   : > { %s1271_s11 = scalar_select %p1122_p5, 1, 0 }
   0xd   : > { %s1272_s12 = scalar_select %p1126_p6, 1, 0 }
   0xe   : > { %p1268_p9 = scmp.eq.s32.totalorder %s1105_s28, 0  ;;  %p1133_p10 = pnand %p742_p7, %p204_p8 }
   0xf   : > { %s1038_s14 = smov [#allocation2]   ;;  %s942_s19 = scalar_lea.hbm %s1265_s5, 1024 }
  0x10   : > { %s1273_s13 = scalar_select %p1133_p10, 1, 0 }
  0x11   : > { %s228_s15 = sshll.u32 %s1038_s14, 4  ;;  %p876_p11 = pneg %p1133_p10  ;;  %s229_s15 = int_to_ptr.vmem [resolvable:$true] %s228_s15 }
  0x12   : > { %p943_p13 = scmp.ne.s32.totalorder %s1265_s5, %s942_s19  ;;  %p949_p3 = scmp.lt.u32.totalorder %s942_s19, %s1265_s5 }
  0x13   : > { %p1141_p12 = pnand %p1268_p9, %p876_p11 }
  0x15   : > { %p944_p0 = pneg %p1141_p12 }
  0x17   : > { %p945_p1 = pnand %p944_p0, %p943_p13 }
  0x19   : > { %p946_p2 = pneg %p945_p1 }
  0x1b   : > { %p951_p4 = pnand %p949_p3, %p946_p2 }
  0x1d   : > { %954 = shalt.err (!%p951_p4)
}
  0x1e   : > { %s955_s29 = scalar_lea.vmem %s229_s15, 1024  ;;  %p963_p9 = scmp.lt.s32.totalorder %s229_s15, %s229_s15 }
  0x1f   : > { %p956_p7 = scmp.ne.s32.totalorder %s229_s15, %s955_s29  ;;  %p964_p6 = scmp.lt.s32.totalorder %s955_s29, %s955_s29 }
  0x21   : > { %p958_p8 = pnand %p956_p7, %p944_p0  ;;  %p965_p5 = por %p964_p6, %p963_p9 }
  0x23   : > { %p959_p11 = pneg %p958_p8 }
  0x25   : > { %p966_p10 = pnand %p965_p5, %p959_p11 }
  0x27   : > { %969 = shalt.err (!%p966_p10)
}
  0x28   : > { %s1039_s8 = smov 64   ;;  %s1040_s9 = smov 4  }
  0x29   : > { %879 = dma.hbm_to_vmem [thread:$0]  (!%p1141_p12), %s1265_s5, 1024, %s229_s15, [#allocation3], %s1039_s8, %s1039_s8, %s1040_s9  }
  0x2a   : > { %p1275_p13 = scmp.ne.s32.totalorder %s1273_s13, 0 }
  0x2b   : > { %p1276_p1 = scmp.eq.s32.totalorder (!%p1275_p13), %s1105_s28, 0 }
  0x2c   : > { %256 = sbr.rel (%p1275_p13) target bundleno = 740 (0x2e4), region = 48 }
  0x33   : > { %1015 = dma.done.wait (%p1276_p1), [#allocation3], 1024   ;;  %p1277_p0 = pmov %p1276_p1 }
  0x34   : > { %s748_s18 = sshll.u32 %s1105_s28, 2  ;;  %v924_v0 = vld [vmem:[%s1261_s1] sm:$0xff]   ;;  %v925_v1 = vld [vmem:[%s1261_s1 + $0x8] sm:$0xff]   ;;  %vm325_vm0 = vcmask 261120   ;;  %v928_v10 = vld [vmem:[%s1263_s3 + $0x10] sm:$0xff]   ;;  %s786_s13 = sshll.u32 %s1105_s28, 8 }
  0x35   : > { %1017 = vsyncadd (%p1277_p0), [#allocation3], 4294966272  ;;  %p289_p5 = scmp.lt.s32.totalorder %s748_s18, 7  ;;  %822 = vmatprep.subr.bf16.mxu0 %v924_v0  ;;  %v926_v7 = vld [vmem:[%s1263_s3] sm:$0xff]   ;;  %v927_v8 = vld [vmem:[%s1263_s3 + $0x8] sm:$0xff]   ;;  %s1217_s8 = scalar_lea.hbm %s1267_s7, %s786_s13 }
  0x36   : > { %823 = vmatpush3.bf16.msra.mxu0 %v924_v0  ;;  %830 = vmatprep.subr.bf16.mxu1 %v926_v7  ;;  %v929_v11 = vld [vmem:[%s1263_s3 + $0x18] sm:$0xff]   ;;  %v930_v12 = vld [vmem:[%s1263_s3 + $0x20] sm:$0xff]   ;;  %v931_v13 = vld [vmem:[%s1263_s3 + $0x28] sm:$0xff]   ;;  %p1278_p9 = scmp.ne.s32.totalorder %s1271_s11, 0  ;;  %s1041_s14 = smov [#allocation5]  }
  0x37   : > { %s1285_s18 = smov (!%p289_p5, %s748_s18), 7  ;;  %824 = vmatprep.subr.bf16.mxu0 %v925_v1  ;;  %831 = vmatpush3.bf16.msra.mxu1 %v926_v7  ;;  %v932_v14 = vld [vmem:[%s1263_s3 + $0x30] sm:$0xff]   ;;  %v933_v15 = vld [vmem:[%s1263_s3 + $0x38] sm:$0xff]   ;;  %v934_v16 = vld [vmem:[#allocation2] sm:$0xff]   ;;  %s974_s17 = sshll.u32 %s1041_s14, 4  ;;  %s975_s17 = int_to_ptr.vmem [resolvable:$false] %s974_s17 }
  0x38   : > { %s749_s19 = sshll.u32 %s1285_s18, 3  ;;  %832 = vmatprep.subr.bf16.mxu1 %v927_v8  ;;  %v935_v17 = vld [vmem:[#allocation2 + $0x8] sm:$0xff]   ;;  %v936_v18 = vld [vmem:[#allocation2 + $0x10] sm:$0xff]   ;;  %v937_v19 = vld [vmem:[#allocation2 + $0x18] sm:$0xff]   ;;  %s976_s18 = scalar_lea.vmem %s975_s17, 512 }
  0x39   : > { %s292_s21 = scalar_lea.vmem %s1260_s0, %s749_s19  ;;  %v938_v20 = vld [vmem:[#allocation2 + $0x20] sm:$0xff]   ;;  %v939_v21 = vld [vmem:[#allocation2 + $0x28] sm:$0xff]   ;;  %v940_v37 = vld [vmem:[#allocation2 + $0x30] sm:$0xff]   ;;  %s285_s19 = sand.u32 1, %s1028_s25  }
  0x3a   : > { %v296_v2 = vld [vmem:[%s292_s21] sm:$0xff]  ;;  %v297_v3 = vld [vmem:[%s292_s21 + $0x8] sm:$0xff]  ;;  %v298_v4 = vld [vmem:[%s292_s21 + $0x10] sm:$0xff]  ;;  %825 = vmatpush3.bf16.msra.mxu0 %v925_v1  ;;  %s747_s20 = sshll.u32 %s285_s19, 4  ;;  %s1219_s28 = scalar_lea.sflag [#allocation4], %s285_s19 }
  0x3b   : > { %v300_v5 = vpack.c.bf16 %v297_v3, %v296_v2  ;;  %v299_v6 = vld [vmem:[%s292_s21 + $0x18] sm:$0xff]  ;;  %833 = vmatpush3.bf16.msra.mxu1 %v927_v8  ;;  %850 = vmatprep.subr.bf16.mxu0 %v934_v16  ;;  %v750_v22 = vld [vmem:[%s1262_s2] ss:$0 sm:$0xff]  ;;  %s287_s22 = scalar_lea.vmem [#allocation5], %s747_s20 }
  0x3c   : > { %v301_v9 = vpack.c.bf16 %v299_v6, %v298_v4  ;;  %834 = vmatprep.subr.bf16.mxu1 %v928_v10  ;;  %v941_v38 = vld [vmem:[#allocation2 + $0x38] sm:$0xff]   ;;  %v755_v39 = vld [vmem:[%s1264_s4] ss:$0 sm:$0xff]  ;;  %s667_s15 = sshll.u32 %s287_s22, 4  ;;  %s1212_s15 = int_to_ptr.vmem [resolvable:$true] %s667_s15 }
  0x3d   : > { %826 = vmatprep.mubr.msk.bf16.mxu0 %vm325_vm0, %v300_v5  ;;  %v764_v55 = vld [vmem:[%s1266_s6] ss:$0 sm:$0xff]  ;;  %s970_s9 = scalar_lea.vmem %s1212_s15, 256  ;;  %p977_p2 = scmp.lt.s32.totalorder %s1212_s15, %s975_s17 }
  0x3e   : > { %827 = vmatmul.mubr.msk.bf16.vlgmr.msra.gmra.mrb[0].mxu0 %vm325_vm0, %v301_v9  ;;  %p971_p6 = scmp.ne.s32.totalorder %s1212_s15, %s970_s9  ;;  %p978_p3 = scmp.lt.s32.totalorder %s976_s18, %s970_s9 }
  0x3f   : > { %835 = vmatpush3.bf16.msra.mxu1 %v928_v10  ;;  %851 = vmatpush3.bf16.msra.mxu0 %v934_v16 }
  0x40   : > { %836 = vmatprep.subr.bf16.mxu1 %v929_v11  ;;  %852 = vmatprep.subr.bf16.mxu0 %v935_v17  ;;  %p972_p10 = pnand %p971_p6, %p1278_p9  ;;  %p979_p4 = por %p978_p3, %p977_p2 }
  0x42   : > { %p973_p12 = pneg %p972_p10 }
  0x43   : > { %837 = vmatpush3.bf16.msra.mxu1 %v929_v11  ;;  %853 = vmatpush3.bf16.msra.mxu0 %v935_v17 }
  0x44   : > { %838 = vmatprep.subr.bf16.mxu1 %v930_v12  ;;  %854 = vmatprep.subr.bf16.mxu0 %v936_v18  ;;  %p980_p7 = pnand %p979_p4, %p973_p12 }
  0x47   : > { %839 = vmatpush3.bf16.msra.mxu1 %v930_v12  ;;  %855 = vmatpush3.bf16.msra.mxu0 %v936_v18 }
  0x48   : > { %840 = vmatprep.subr.bf16.mxu1 %v931_v13  ;;  %856 = vmatprep.subr.bf16.mxu0 %v937_v19 }
  0x4b   : > { %841 = vmatpush3.bf16.msra.mxu1 %v931_v13  ;;  %857 = vmatpush3.bf16.msra.mxu0 %v937_v19 }
  0x4c   : > { %842 = vmatprep.subr.bf16.mxu1 %v932_v14  ;;  %858 = vmatprep.subr.bf16.mxu0 %v938_v20 }
  0x4f   : > { %843 = vmatpush3.bf16.msra.mxu1 %v932_v14  ;;  %859 = vmatpush3.bf16.msra.mxu0 %v938_v20 }
  0x50   : > { %844 = vmatprep.subr.bf16.mxu1 %v933_v15  ;;  %860 = vmatprep.subr.bf16.mxu0 %v939_v21 }
  0x53   : > { %845 = vmatpush3.bf16.msra.mxu1 %v933_v15  ;;  %861 = vmatpush3.bf16.msra.mxu0 %v939_v21 }
  0x54   : > { %862 = vmatprep.subr.bf16.mxu0 %v940_v37 }
  0x57   : > { %863 = vmatpush3.bf16.msra.mxu0 %v940_v37 }
  0x58   : > { %864 = vmatprep.subr.bf16.mxu0 %v941_v38 }
  0x5b   : > { %865 = vmatpush3.bf16.msra.mxu0 %v941_v38 }
 0x111   : > { %v828_v23 = vpop.f32.mrb[0].mxu0 }
 0x112   : > { %v375_v24 = vadd.f32 %v828_v23, %v750_v22  ;;  %v366_v25 = vpop.f32.mrb[1].mxu0 }
 0x113   : > { %v367_v26 = vadd.f32 %v750_v22, %v366_v25  ;;  %v829_v27 = vpop.f32.mrb[2].mxu0 }
 0x114   : > { %v378_v28 = vadd.f32 %v829_v27, %v750_v22  ;;  %v369_v29 = vpop.f32.mrb[3].mxu0  ;;  %v383_v31 = vmax.f32 %v375_v24, 0.0 }
 0x115   : > { %v370_v30 = vadd.f32 %v750_v22, %v369_v29  ;;  %v381_v33 = vmax.f32 %v367_v26, 0.0 }
 0x116   : > { %v384_v32 = vmax.f32 %v378_v28, 0.0 }
 0x117   : > { %v382_v34 = vmax.f32 %v370_v30, 0.0 }
 0x118   : > { %v386_v35 = vpack.c.bf16 %v384_v32, %v383_v31 }
 0x119   : > { %v385_v36 = vpack.c.bf16 %v382_v34, %v381_v33 }
 0x11b   : > { %846 = vmatprep.mubr.bf16.mxu1 %v385_v36 }
 0x11c   : > { %847 = vmatmul.mubr.bf16.vlgmr.msra.gmra.mrb[0].mxu1 %v386_v35 }
 0x1ef   : > { %v848_v40 = vpop.f32.mrb[0].mxu1 }
 0x1f0   : > { %v501_v41 = vadd.f32 %v848_v40, %v755_v39  ;;  %v492_v42 = vpop.f32.mrb[1].mxu1 }
 0x1f1   : > { %v493_v43 = vadd.f32 %v755_v39, %v492_v42  ;;  %v849_v44 = vpop.f32.mrb[2].mxu1 }
 0x1f2   : > { %v504_v45 = vadd.f32 %v849_v44, %v755_v39  ;;  %v495_v46 = vpop.f32.mrb[3].mxu1  ;;  %v509_v48 = vmax.f32 %v501_v41, 0.0 }
 0x1f3   : > { %v496_v47 = vadd.f32 %v755_v39, %v495_v46  ;;  %v507_v50 = vmax.f32 %v493_v43, 0.0 }
 0x1f4   : > { %v510_v49 = vmax.f32 %v504_v45, 0.0 }
 0x1f5   : > { %v508_v51 = vmax.f32 %v496_v47, 0.0 }
 0x1f6   : > { %v512_v52 = vpack.c.bf16 %v510_v49, %v509_v48 }
 0x1f7   : > { %v511_v53 = vpack.c.bf16 %v508_v51, %v507_v50 }
 0x1f9   : > { %866 = vmatprep.mubr.bf16.mxu0 %v511_v53 }
 0x1fa   : > { %867 = vmatmul.mubr.bf16.vlgmr.msra.gmra.mrb[4].mxu0 %v512_v52 }
 0x2cd   : > { %v868_v54 = vpop.f32.mrb[4].mxu0 }
 0x2ce   : > { %v618_v56 = vpop.f32.mrb[5].mxu0  ;;  %v627_v58 = vadd.f32 %v868_v54, %v764_v55 }
 0x2cf   : > { %v869_v57 = vpop.f32.mrb[6].mxu0  ;;  %v619_v61 = vadd.f32 %v764_v55, %v618_v56 }
 0x2d0   : > { %v630_v59 = vadd.f32 %v869_v57, %v764_v55  ;;  %v621_v60 = vpop.f32.mrb[7].mxu0 }
 0x2d1   : > { %v622_v62 = vadd.f32 %v764_v55, %v621_v60 }
 0x2d2   : > { %v795_v63 = vpack.c.bf16 %v630_v59, %v627_v58 }
 0x2d3   : > { %v790_v0 = vpack.c.bf16 %v622_v62, %v619_v61 }
 0x2d4   : > { %797 = vst [vmem:[%s287_s22 + $0x8] sm:$0xff] %v795_v63  }
 0x2d5   : > { %791 = vst [vmem:[%s287_s22] sm:$0xff] %v790_v0  }
 0x2d6   : > { %983 = shalt.err (!%p980_p7)
}
 0x2d7   : > { %s984_s19 = scalar_lea.hbm %s1217_s8, 256  ;;  %s988_s21 = scalar_lea.hbm %s1267_s7, 512 }
 0x2d8   : > { %p985_p8 = scmp.ne.s32.totalorder %s1217_s8, %s984_s19  ;;  %p989_p1 = scmp.lt.u32.totalorder %s1217_s8, %s1267_s7 }
 0x2d9   : > { %p990_p0 = scmp.lt.u32.totalorder %s988_s21, %s984_s19  ;;  %p992_p6 = scmp.lt.u32.totalorder %s984_s19, %s1217_s8 }
 0x2da   : > { %p986_p11 = pnand %p985_p8, %p1278_p9 }
 0x2db   : > { %p991_p5 = por %p990_p0, %p989_p1 }
 0x2dc   : > { %p987_p13 = pneg %p986_p11 }
 0x2dd   : > { %p993_p10 = por %p992_p6, %p991_p5 }
 0x2df   : > { %p994_p12 = pnand %p993_p10, %p987_p13 }
 0x2e1   : > { %997 = shalt.err (!%p994_p12)
}
 0x2e2   : > { %s1042_s23 = smov 64   ;;  %s1043_s29 = smov 4  }
 0x2e3   : > { %874 = dma.vmem_to_hbm [thread:$0]  (%p1278_p9), %s1212_s15, 256, %s1217_s8, %s1219_s28, %s1042_s23, %s1042_s23, %s1043_s29  }
 0x2e4 PF: > { %p886_p2 = scmp.ge.s32.totalorder %s1036_s27, 2  ;;  %s682_s9 = sand.u32 1, %s1024_s24  }
 0x2e5   : > { %p1279_p3 = scmp.ne.s32.totalorder %s1272_s12, 0  ;;  %s683_s14 = scalar_lea.sflag [#allocation4], %s682_s9 }
 0x2e7   : > { %p881_p4 = pnand %p886_p2, %p1279_p3 }
 0x2e9   : > { %1019 = dma.done.wait (!%p881_p4), %s683_s14, 256  }
 0x2ea   : > { %1021 = vsyncadd (!%p881_p4), %s683_s14, 4294967040  ;;  %p18_p7 = scmp.ge.s32.totalorder %s1109_s30, 4   ;;  %s1280_s24 = smov %s1028_s25 }
 0x2eb   : > { %s1281_s25 = smov %s1032_s26  ;;  %s1282_s26 = smov %s1120_s10 }
 0x2ec   : > { %s1283_s27 = smov %s1109_s30  ;;  %20 = sbr.rel (!%p18_p7) target bundleno = 4 (0x4), region = 88 }
 0x2f3   :  { %688 = vsyncpa [#allocation3], 1 }
 0x2f4   :  { %690 = vsyncpa [#allocation3 + $0x1], 1 }
 0x2f5   :  { %691 = vsyncpa [#allocation4], 1 }
 0x2f6   :  { %693 = vsyncpa [#allocation4 + $0x1], 1 }

</bundles_post_ra>
